<compile_context>
chip_gen: v5e
topology: v5e:2x2
jax: 0.10.0
libtpu: 0.0.40
codegen_flags: <defaults>
</compile_context>

<pallas_src>
import math

import jax
import jax.numpy as jnp
from jax.experimental import pallas as pl
from jax.experimental.pallas import tpu as pltpu


def st_gcn_kernel(x_ref, a_ref, cs_ref, wg_ref, wr_ref, wt_ref, vec_ref, o_ref):
    # x_ref  : (C_in, L)    bf16  lane-dense activations for TB samples
    # a_ref  : (1, L, L)    bf16  block-diagonal adjacency of this group
    # cs_ref : (1, 1, L)    f32   column sums of A (reordered gcn bias row)
    # wg/wr  : (C_out, C_in) bf16, wt_ref: (C_out, C_out) bf16 (BN scales folded)
    # vec_ref: (C_out, 5)   f32   [b_gcn | bn1_shift | b_tcn+b_res | alpha1 | alpha2]
    # o_ref  : (C_out, L)   f32
    x = x_ref[...]
    A = a_ref[0]
    cs = cs_ref[0]                     # (1, L)
    vec = vec_ref[...]
    b_gcn = vec[:, 0:1]
    sh1 = vec[:, 1:2]
    b_sum = vec[:, 2:3]
    a1 = vec[:, 3:4]
    a2 = vec[:, 4:5]

    # Graph mix first (reordered): xa = x @ A_blockdiag  -> C_in contraction rows.
    xa = jnp.dot(x, A, preferred_element_type=jnp.float32)           # (C_in, L)

    # gcn 1x1 conv (BN1 scale folded); reordered bias = b_gcn (x) colsum(A) + sh1.
    z = jnp.dot(wg_ref[...], xa.astype(jnp.bfloat16),
                preferred_element_type=jnp.float32)
    z = z + b_gcn * cs + sh1

    # tcn: PReLU -> 1x1 conv (BN2 folded) -> dropout(p=0, identity)
    p = jnp.where(z > 0, z, a1 * z)
    q = jnp.dot(wt_ref[...], p.astype(jnp.bfloat16),
                preferred_element_type=jnp.float32)

    # residual 1x1 conv (+ BN folded); its bias is merged into b_sum on host.
    r = jnp.dot(wr_ref[...], x, preferred_element_type=jnp.float32)

    s = q + r + b_sum
    o_ref[...] = jnp.where(s > 0, s, a2 * s)


def _choose_tiling(n, v, max_lanes=256):
    """Smallest lane-dense group: L = TB*V_p, a multiple of 128.

    Prefer the smallest TB with TB*V % 128 == 0 (no node padding).  When that
    would make L large (awkward / odd V), zero-pad V up to a power of two (or a
    multiple of 128 if V >= 128) instead of falling back to TB=N, so blocks
    stay small on every TPU generation."""
    t0 = 128 // math.gcd(v, 128)
    if t0 * v <= max(128, max_lanes):
        tb, v_p = t0, v
    elif v >= 128:
        tb, v_p = 1, ((v + 127) // 128) * 128
    else:
        v_p = 1
        while v_p < v:
            v_p *= 2
        tb = 128 // v_p
    g = -(-n // tb)                     # ceil(n / tb); batch zero-padded to g*tb
    return tb, v_p, g, tb * v_p


def st_gcn_forward(x, A, params):
    N, C_in, V = x.shape
    C_out = params["w_gcn"].shape[0]

    TB, V_p, G, L = _choose_tiling(N, V)
    N_p = G * TB

    # ---- fold eval-mode BN affines into conv weights / biases (f32) ----
    s1, sh1 = params["bn1_scale"], params["bn1_shift"]
    s2, sh2 = params["bn2_scale"], params["bn2_shift"]
    sr, shr = params["bnr_scale"], params["bnr_shift"]
    w_gcn = params["w_gcn"] * s1
    b_gcn = params["b_gcn"] * s1        # re-applied via colsum(A) after the mix
    w_tcn = params["w_tcn"] * s2
    w_res = params["w_res"] * sr
    b_sum = (params["b_tcn"] * s2 + sh2) + (params["b_res"] * sr + shr)
    a1 = jnp.broadcast_to(params["alpha1"].reshape(1, 1), (C_out, 1))
    a2 = jnp.broadcast_to(params["alpha2"].reshape(1, 1), (C_out, 1))
    vec = jnp.concatenate([b_gcn, sh1, b_sum, a1, a2], axis=1)       # (C_out, 5)

    # ---- activations: zero-pad (batch, nodes), go lane-dense (C_in, G*L), bf16 ----
    xp = jnp.zeros((N_p, C_in, V_p), x.dtype).at[:N, :, :V].set(x)
    x2 = jnp.transpose(xp, (1, 0, 2)).reshape(C_in, N_p * V_p).astype(jnp.bfloat16)

    # ---- per-group block-diagonal adjacency (static diagonal writes, no eye-einsum) ----
    Ap = jnp.zeros((N_p, V_p, V_p), A.dtype).at[:N, :V, :V].set(A)
    Ag = Ap.reshape(G, TB, V_p, V_p)
    A_bd = jnp.zeros((G, L, L), A.dtype)
    for b in range(TB):
        A_bd = A_bd.at[:, b * V_p:(b + 1) * V_p, b * V_p:(b + 1) * V_p].set(Ag[:, b])
    cs = jnp.sum(A_bd, axis=1, keepdims=True)        # (G, 1, L) f32 column sums
    A_bd = A_bd.astype(jnp.bfloat16)

    wg = w_gcn.astype(jnp.bfloat16)
    wr = w_res.astype(jnp.bfloat16)
    wt = w_tcn.astype(jnp.bfloat16)

    out2 = pl.pallas_call(
        st_gcn_kernel,
        out_shape=jax.ShapeDtypeStruct((C_out, N_p * V_p), jnp.float32),
        grid_spec=pltpu.PrefetchScalarGridSpec(
            num_scalar_prefetch=0,
            grid=(G,),
            in_specs=[
                pl.BlockSpec((C_in, L), lambda g: (0, g)),       # activations
                # Largest per-step transfer; if a profile shows its fetch
                # exposed, add pipeline_mode=pl.Buffered(3) here.
                pl.BlockSpec((1, L, L), lambda g: (g, 0, 0)),    # block-diag A (bf16)
                pl.BlockSpec((1, 1, L), lambda g: (g, 0, 0)),    # colsum rows
                pl.BlockSpec((C_out, C_in), lambda g: (0, 0)),   # w_gcn (resident)
                pl.BlockSpec((C_out, C_in), lambda g: (0, 0)),   # w_res (resident)
                pl.BlockSpec((C_out, C_out), lambda g: (0, 0)),  # w_tcn (resident)
                pl.BlockSpec((C_out, 5), lambda g: (0, 0)),      # bias/alpha pack
            ],
            out_specs=pl.BlockSpec((C_out, L), lambda g: (0, g)),
        ),
        # Grid over groups is reduction-free -> "parallel" (shards across the
        # two v7x TensorCores when G >= 2; no-op on v5e/v6e).
        compiler_params=pltpu.CompilerParams(
            dimension_semantics=("parallel",)),
    )(x2, A_bd, cs, wg, wr, wt, vec)

    # strip padding, back to PyTorch layout (N, C_out, V)
    out = out2.reshape(C_out, N_p, V_p)[:, :N, :V]
    return jnp.transpose(out, (1, 0, 2)), A


def st_gcn_reference(x, A, params):
    """Pure-JAX f32 reference mirroring the PyTorch forward (eval mode, unfused)."""
    y = jnp.einsum("oc,ncv->nov", params["w_gcn"], x) + params["b_gcn"][None]
    z = jnp.einsum("ncv,nvw->ncw", y, A)
    zn = z * params["bn1_scale"][None] + params["bn1_shift"][None]
    a1 = params["alpha1"][0, 0]
    p = jnp.where(zn > 0, zn, a1 * zn)
    q = jnp.einsum("oc,ncv->nov", params["w_tcn"], p) + params["b_tcn"][None]
    qn = q * params["bn2_scale"][None] + params["bn2_shift"][None]
    r = jnp.einsum("oc,ncv->nov", params["w_res"], x) + params["b_res"][None]
    rn = r * params["bnr_scale"][None] + params["bnr_shift"][None]
    out = qn + rn
    a2 = params["alpha2"][0, 0]
    return jnp.where(out > 0, out, a2 * out)


def make_params(key, c_in, c_out):
    """Deterministic synthetic parameters (no checkpoint load).

    BatchNorm1d (eval mode) folded into per-channel affine scale/shift:
      scale = gamma / sqrt(running_var + eps), shift = beta - running_mean*scale
    PReLU uses a single learnable alpha (PyTorch default init 0.25).
    """
    ks = jax.random.split(key, 12)
    eps = 1e-5

    def bn(kg, kb, km, kv):
        gamma = 1.0 + 0.1 * jax.random.normal(kg, (c_out, 1), jnp.float32)
        beta = 0.1 * jax.random.normal(kb, (c_out, 1), jnp.float32)
        mean = 0.1 * jax.random.normal(km, (c_out, 1), jnp.float32)
        var = jnp.abs(1.0 + 0.1 * jax.random.normal(kv, (c_out, 1), jnp.float32))
        scale = gamma / jnp.sqrt(var + eps)
        shift = beta - mean * scale
        return scale, shift

    p = {}
    p["w_gcn"] = 0.3 * jax.random.normal(ks[0], (c_out, c_in), jnp.float32)
    p["b_gcn"] = 0.1 * jax.random.normal(ks[1], (c_out, 1), jnp.float32)
    p["bn1_scale"], p["bn1_shift"] = bn(*jax.random.split(ks[2], 4))
    p["alpha1"] = jnp.full((1, 1), 0.25, jnp.float32)
    p["w_tcn"] = 0.3 * jax.random.normal(ks[3], (c_out, c_out), jnp.float32)
    p["b_tcn"] = 0.1 * jax.random.normal(ks[4], (c_out, 1), jnp.float32)
    p["bn2_scale"], p["bn2_shift"] = bn(*jax.random.split(ks[5], 4))
    p["w_res"] = 0.3 * jax.random.normal(ks[6], (c_out, c_in), jnp.float32)
    p["b_res"] = 0.1 * jax.random.normal(ks[7], (c_out, 1), jnp.float32)
    p["bnr_scale"], p["bnr_shift"] = bn(*jax.random.split(ks[8], 4))
    p["alpha2"] = jnp.full((1, 1), 0.25, jnp.float32)
    return p


if __name__ == "__main__":
    # Small shapes consistent with the module's forward:
    #   x: (N, C_in, V), A: (N, V, V)   (Conv1d / einsum('ncv,nvw->ncw') path)
    # N=16, V=16 -> TB=8, V_p=16, L=128 (lane-dense), G=2 grid steps.
    N, C_IN, C_OUT, V = 16, 4, 8, 16

    key = jax.random.PRNGKey(0)
    kx, ka, kp = jax.random.split(key, 3)
    x = jax.random.normal(kx, (N, C_IN, V), jnp.float32)
    A = jax.random.normal(ka, (N, V, V), jnp.float32)
    params = make_params(kp, C_IN, C_OUT)

    out, A_out = st_gcn_forward(x, A, params)
    out = jax.block_until_ready(out)

    ref = st_gcn_reference(x, A, params)
    assert out.shape == (N, C_OUT, V)
    # bf16 MXU operands with f32 accumulation -> relaxed tolerance vs f32 reference.
    err = float(jnp.max(jnp.abs(out - ref)))
    scale = float(jnp.max(jnp.abs(ref)))
    assert err <= 3e-2 * scale + 1e-3, f"mismatch vs reference: {err} (scale {scale})"
    assert jnp.array_equal(A_out, A)

    print("KERNEL_OK")
</pallas_src>

<mosaic_0001>
module attributes {stable_mosaic.version = 11 : i64} {
  func.func @st_gcn_kernel(%arg0: i32, %arg1: memref<4x128xbf16, #tpu.memory_space<vmem>>, %arg2: memref<1x128x128xbf16, #tpu.memory_space<vmem>>, %arg3: memref<1x1x128xf32, #tpu.memory_space<vmem>>, %arg4: memref<8x4xbf16, #tpu.memory_space<vmem>>, %arg5: memref<8x4xbf16, #tpu.memory_space<vmem>>, %arg6: memref<8x8xbf16, #tpu.memory_space<vmem>>, %arg7: memref<8x5xf32, #tpu.memory_space<vmem>>, %arg8: memref<8x128xf32, #tpu.memory_space<vmem>>) attributes {dimension_semantics = [#tpu.dimension_semantics<parallel>], iteration_bounds = array<i64: 2>, scalar_prefetch = 0 : i64, scratch_operands = 0 : i64, tpu.core_type = #tpu.core_type<tc>, window_params = [{transform_indices = @transform_0, window_bounds = array<i64: 4, 128>}, {transform_indices = @transform_1, window_bounds = array<i64: 1, 128, 128>}, {transform_indices = @transform_2, window_bounds = array<i64: 1, 1, 128>}, {pipeline_mode = #tpu.pipeline_mode<synchronous>, transform_indices = @transform_3, window_bounds = array<i64: 8, 4>}, {pipeline_mode = #tpu.pipeline_mode<synchronous>, transform_indices = @transform_4, window_bounds = array<i64: 8, 4>}, {pipeline_mode = #tpu.pipeline_mode<synchronous>, transform_indices = @transform_5, window_bounds = array<i64: 8, 8>}, {pipeline_mode = #tpu.pipeline_mode<synchronous>, transform_indices = @transform_6, window_bounds = array<i64: 8, 5>}, {transform_indices = @transform_7, window_bounds = array<i64: 8, 128>}]} {
    %c0 = arith.constant 0 : index
    %c0_0 = arith.constant 0 : index
    %0 = vector.load %arg1[%c0, %c0_0] : memref<4x128xbf16, #tpu.memory_space<vmem>>, vector<4x128xbf16>
    %c0_1 = arith.constant 0 : index
    %c0_2 = arith.constant 0 : index
    %c0_3 = arith.constant 0 : index
    %1 = vector.load %arg2[%c0_1, %c0_2, %c0_3] : memref<1x128x128xbf16, #tpu.memory_space<vmem>>, vector<1x128x128xbf16>
    %2 = vector.shape_cast %1 : vector<1x128x128xbf16> to vector<128x128xbf16>
    %c0_4 = arith.constant 0 : index
    %c0_5 = arith.constant 0 : index
    %c0_6 = arith.constant 0 : index
    %3 = vector.load %arg3[%c0_4, %c0_5, %c0_6] : memref<1x1x128xf32, #tpu.memory_space<vmem>>, vector<1x1x128xf32>
    %4 = vector.shape_cast %3 : vector<1x1x128xf32> to vector<1x128xf32>
    %c0_7 = arith.constant 0 : index
    %c0_8 = arith.constant 0 : index
    %5 = vector.load %arg7[%c0_7, %c0_8] : memref<8x5xf32, #tpu.memory_space<vmem>>, vector<8x5xf32>
    %6 = vector.extract_strided_slice %5 {offsets = [0, 0], sizes = [8, 1], strides = [1, 1]} : vector<8x5xf32> to vector<8x1xf32>
    %7 = vector.extract_strided_slice %5 {offsets = [0, 1], sizes = [8, 1], strides = [1, 1]} : vector<8x5xf32> to vector<8x1xf32>
    %8 = vector.extract_strided_slice %5 {offsets = [0, 2], sizes = [8, 1], strides = [1, 1]} : vector<8x5xf32> to vector<8x1xf32>
    %9 = vector.extract_strided_slice %5 {offsets = [0, 3], sizes = [8, 1], strides = [1, 1]} : vector<8x5xf32> to vector<8x1xf32>
    %10 = vector.extract_strided_slice %5 {offsets = [0, 4], sizes = [8, 1], strides = [1, 1]} : vector<8x5xf32> to vector<8x1xf32>
    %cst = arith.constant dense<0.000000e+00> : vector<4x128xf32>
    %11 = tpu.matmul %0, %2, %cst {dimension_numbers = #tpu.dot_dimension_numbers<[1], [0], [0], [1], [0, 0, 1, 1], [], []>} : vector<4x128xbf16>, vector<128x128xbf16>, vector<4x128xf32> -> vector<4x128xf32>
    %c0_9 = arith.constant 0 : index
    %c0_10 = arith.constant 0 : index
    %12 = vector.load %arg4[%c0_9, %c0_10] : memref<8x4xbf16, #tpu.memory_space<vmem>>, vector<8x4xbf16>
    %13 = arith.truncf %11 : vector<4x128xf32> to vector<4x128xbf16>
    %cst_11 = arith.constant dense<0.000000e+00> : vector<8x128xf32>
    %14 = tpu.matmul %12, %13, %cst_11 {dimension_numbers = #tpu.dot_dimension_numbers<[1], [0], [0], [1], [0, 0, 1, 1], [], []>} : vector<8x4xbf16>, vector<4x128xbf16>, vector<8x128xf32> -> vector<8x128xf32>
    %15 = vector.broadcast %6 : vector<8x1xf32> to vector<8x128xf32>
    %16 = vector.broadcast %4 : vector<1x128xf32> to vector<8x128xf32>
    %17 = arith.mulf %15, %16 : vector<8x128xf32>
    %18 = arith.addf %14, %17 : vector<8x128xf32>
    %19 = vector.broadcast %7 : vector<8x1xf32> to vector<8x128xf32>
    %20 = arith.addf %18, %19 : vector<8x128xf32>
    %cst_12 = arith.constant 0.000000e+00 : f32
    %21 = vector.broadcast %cst_12 : f32 to vector<8x128xf32>
    %22 = arith.cmpf ogt, %20, %21 : vector<8x128xf32>
    %23 = vector.broadcast %9 : vector<8x1xf32> to vector<8x128xf32>
    %24 = arith.mulf %23, %20 : vector<8x128xf32>
    %25 = arith.select %22, %20, %24 : vector<8x128xi1>, vector<8x128xf32>
    %c0_13 = arith.constant 0 : index
    %c0_14 = arith.constant 0 : index
    %26 = vector.load %arg6[%c0_13, %c0_14] : memref<8x8xbf16, #tpu.memory_space<vmem>>, vector<8x8xbf16>
    %27 = arith.truncf %25 : vector<8x128xf32> to vector<8x128xbf16>
    %cst_15 = arith.constant dense<0.000000e+00> : vector<8x128xf32>
    %28 = tpu.matmul %26, %27, %cst_15 {dimension_numbers = #tpu.dot_dimension_numbers<[1], [0], [0], [1], [0, 0, 1, 1], [], []>} : vector<8x8xbf16>, vector<8x128xbf16>, vector<8x128xf32> -> vector<8x128xf32>
    %c0_16 = arith.constant 0 : index
    %c0_17 = arith.constant 0 : index
    %29 = vector.load %arg5[%c0_16, %c0_17] : memref<8x4xbf16, #tpu.memory_space<vmem>>, vector<8x4xbf16>
    %cst_18 = arith.constant dense<0.000000e+00> : vector<8x128xf32>
    %30 = tpu.matmul %29, %0, %cst_18 {dimension_numbers = #tpu.dot_dimension_numbers<[1], [0], [0], [1], [0, 0, 1, 1], [], []>} : vector<8x4xbf16>, vector<4x128xbf16>, vector<8x128xf32> -> vector<8x128xf32>
    %31 = arith.addf %28, %30 : vector<8x128xf32>
    %32 = vector.broadcast %8 : vector<8x1xf32> to vector<8x128xf32>
    %33 = arith.addf %31, %32 : vector<8x128xf32>
    %cst_19 = arith.constant 0.000000e+00 : f32
    %34 = vector.broadcast %cst_19 : f32 to vector<8x128xf32>
    %35 = arith.cmpf ogt, %33, %34 : vector<8x128xf32>
    %36 = vector.broadcast %10 : vector<8x1xf32> to vector<8x128xf32>
    %37 = arith.mulf %36, %33 : vector<8x128xf32>
    %38 = arith.select %35, %33, %37 : vector<8x128xi1>, vector<8x128xf32>
    %c0_20 = arith.constant 0 : index
    %c0_21 = arith.constant 0 : index
    %39 = vector.load %arg8[%c0_20, %c0_21] : memref<8x128xf32, #tpu.memory_space<vmem>>, vector<8x128xf32>
    tpu.vector_store %arg8[%c0_20, %c0_21], %38 {strides = array<i32>} : memref<8x128xf32, #tpu.memory_space<vmem>>, vector<8x128xf32>,
    return
  }
  func.func @transform_0(%arg0: i32) -> (i32, i32) {
    %c0_i32 = arith.constant 0 : i32
    %c0_i32_0 = arith.constant 0 : i32
    return %c0_i32, %arg0 : i32, i32
  }
  func.func @transform_1(%arg0: i32) -> (i32, i32, i32) {
    %c0_i32 = arith.constant 0 : i32
    %c0_i32_0 = arith.constant 0 : i32
    %c0_i32_1 = arith.constant 0 : i32
    return %arg0, %c0_i32, %c0_i32_0 : i32, i32, i32
  }
  func.func @transform_2(%arg0: i32) -> (i32, i32, i32) {
    %c0_i32 = arith.constant 0 : i32
    %c0_i32_0 = arith.constant 0 : i32
    %c0_i32_1 = arith.constant 0 : i32
    return %arg0, %c0_i32, %c0_i32_0 : i32, i32, i32
  }
  func.func @transform_3(%arg0: i32) -> (i32, i32) {
    %c0_i32 = arith.constant 0 : i32
    %c0_i32_0 = arith.constant 0 : i32
    %c0_i32_1 = arith.constant 0 : i32
    return %c0_i32, %c0_i32_0 : i32, i32
  }
  func.func @transform_4(%arg0: i32) -> (i32, i32) {
    %c0_i32 = arith.constant 0 : i32
    %c0_i32_0 = arith.constant 0 : i32
    %c0_i32_1 = arith.constant 0 : i32
    return %c0_i32, %c0_i32_0 : i32, i32
  }
  func.func @transform_5(%arg0: i32) -> (i32, i32) {
    %c0_i32 = arith.constant 0 : i32
    %c0_i32_0 = arith.constant 0 : i32
    %c0_i32_1 = arith.constant 0 : i32
    return %c0_i32, %c0_i32_0 : i32, i32
  }
  func.func @transform_6(%arg0: i32) -> (i32, i32) {
    %c0_i32 = arith.constant 0 : i32
    %c0_i32_0 = arith.constant 0 : i32
    %c0_i32_1 = arith.constant 0 : i32
    return %c0_i32, %c0_i32_0 : i32, i32
  }
  func.func @transform_7(%arg0: i32) -> (i32, i32) {
    %c0_i32 = arith.constant 0 : i32
    %c0_i32_0 = arith.constant 0 : i32
    return %c0_i32, %arg0 : i32, i32
  }
}

</mosaic_0001>

<bundles_post_ra>
// kernel: tpu_custom_call.1
= control target key start
LH: loop header
LB: loop body
LE: loop exit
PB: predicated region body
PF: predicated region fallthrough
CT: control target
= control target key end

     0   :  { %s1219_s0 = inlined_call_operand.hbm [shape: bf16[4,256], index: 0, kind: input, shape index: {}]   ;;  %s1220_s1 = inlined_call_operand.hbm [shape: bf16[2,128,128], index: 1, kind: input, shape index: {}]   ;;  %s1221_s2 = inlined_call_operand.vmem [shape: f32[2,1,128], index: 2, kind: input, shape index: {}]   ;;  %s1222_s3 = inlined_call_operand.vmem [shape: bf16[8,4], index: 3, kind: input, shape index: {}]   ;;  %s1223_s4 = inlined_call_operand.vmem [shape: bf16[8,4], index: 4, kind: input, shape index: {}]   ;;  %s1224_s5 = inlined_call_operand.hbm [shape: bf16[8,8], index: 5, kind: input, shape index: {}]   ;;  %s1225_s6 = inlined_call_operand.vmem [shape: f32[8,5], index: 6, kind: input, shape index: {}]   ;;  %s1226_s7 = inlined_call_operand.hbm [shape: f32[8,256], index: 7, kind: output, shape index: {}]  }
   0x1   :  { %1231 = sst [smem:[#allocation17_spill]] %s1224_s5 }
   0x2   :  { %12 = vsyncpa [#allocation3], 0 }
   0x3   :  { %14 = vsyncpa [#allocation3 + $0x1], 0 }
   0x4   :  { %15 = vsyncpa [#allocation6], 0 }
   0x5   :  { %17 = vsyncpa [#allocation6 + $0x1], 0 }
   0x6   :  { %18 = vsyncpa [#allocation4], 0 }
   0x7   :  { %20 = vsyncpa [#allocation4 + $0x1], 0  ;;  %s1026_s24 = smov 0   ;;  %s1028_s25 = smov 0  }
   0x8   :  { %s1030_s26 = smov 0   ;;  %s1032_s27 = smov 0  }
   0x9 LB: > { %1232 = sst [smem:[#allocation13_spill]] %s972_s26  ;;  %s1047_s28 = sadd.s32 4294967295, %s976_s27   ;;  %s976_s27 = sphi %s1032_s27, %s1244_s27   ;;  %s972_s26 = sphi %s1030_s26, %s1246_s26   ;;  %s968_s25 = sphi %s1028_s25, %s1248_s25   ;;  %s964_s24 = sphi %s1026_s24, %s1247_s24  }
   0xa   : > { %s674_s29 = sadd.s32 4294967294, %s976_s27   ;;  %p46_p0 = scmp.ne.s32.totalorder %s968_s25, %s964_s24 }
   0xb   : > { %p47_p1 = scmp.eq.s32.totalorder %s1047_s28, 0  ;;  %p206_p2 = scmp.eq.s32.totalorder %s1047_s28, 1 }
   0xc   : > { %p212_p3 = scmp.eq.s32.totalorder %s674_s29, 1  ;;  %p675_p5 = scmp.ge.s32.totalorder %s976_s27, 1 }
   0xd   : > { %p1056_p4 = por %p47_p1, %p46_p0  ;;  %p219_p7 = scmp.lt.s32.totalorder %s976_s27, 3 }
   0xe   : > { %p1061_p6 = por %p212_p3, %p46_p0  ;;  %s1236_s5 = sld [smem:[#allocation17_spill]] }
   0xf   : > { %p1069_p8 = pnand %p675_p5, %p219_p7  ;;  %s978_s13 = smov [#allocation7]  }
  0x10   : > { %s1234_s8 = scalar_select %p1061_p6, 1, 0 }
  0x11   : > { %p746_p10 = pneg %p1069_p8  ;;  %s239_s14 = sshll.u32 %s978_s13, 4  ;;  %s240_s14 = int_to_ptr.vmem [resolvable:$true] %s239_s14 }
  0x12   : > { %1235 = sst [smem:[#allocation14_spill]] %s1234_s8  ;;  %s1079_s15 = sadd.s32 1, %s976_s27  }
  0x13   : > { %p747_p11 = pnand %p746_p10, %p47_p1  ;;  %1238 = sst [smem:[#allocation15_spill]] %s1079_s15 }
  0x14   : > { %s237_s11 = sshll.u32 %s1236_s5, 4  ;;  %s33_s16 = sadd.s32 1, %s972_s26  ;;  %s238_s11 = int_to_ptr.hbm [resolvable:$true] %s237_s11 }
  0x15   : > { %s30_s17 = ssub.s32 %s976_s27, %s1079_s15  ;;  %p40_p13 = scmp.ne.s32.totalorder %s972_s26, %s968_s25 }
  0x16   : > { %749 = dma.hbm_to_vmem [thread:$0]  (!%p747_p11), %s238_s11, 64, %s240_s14, [#allocation6]  }
  0x17   : > { %p31_p12 = scmp.eq.s32.totalorder %s30_s17, 0  ;;  %p41_p0 = scmp.eq.s32.totalorder %s976_s27, 0 }
  0x18   : > { %p762_p3 = scmp.lt.s32.totalorder %s976_s27, 2  ;;  %p1093_p7 = por %p206_p2, %p40_p13 }
  0x19   : > { %s1089_s18 = scalar_select %p31_p12, %s972_s26, %s33_s16  }
  0x1a   : > { %p42_p5 = por %p41_p0, %p40_p13  ;;  %s1098_s20 = sand.u32 1, %s972_s26  }
  0x1b   : > { %1239 = sst [smem:[#allocation16_spill]] %s1089_s18  ;;  %s679_s21 = sshll.u32 %s976_s27, 1 }
  0x1c   : > { %s678_s22 = sshll.u32 %s1098_s20, 1  ;;  %s261_s9 = scalar_lea.hbm %s1219_s0, %s679_s21 }
  0x1d   : > { %s263_s10 = sshll.u32 %s261_s9, 4  ;;  %s257_s11 = scalar_lea.vmem [#allocation2], %s678_s22  ;;  %s264_s10 = int_to_ptr.hbm [resolvable:$true] %s263_s10 }
  0x1e   : > { %s265_s13 = sshll.u32 %s257_s11, 4  ;;  %p1107_p2 = pnand %p762_p3, %p42_p5  ;;  %s266_s13 = int_to_ptr.vmem [resolvable:$true] %s265_s13 }
  0x1f   : > { %s680_s16 = sshll.u32 %s1098_s20, 6  ;;  %s272_s17 = sand.u32 1, %s976_s27  }
  0x20   : > { %s276_s5 = scalar_lea.vmem [#allocation5], %s680_s16  ;;  %s254_s26 = scalar_lea.sflag [#allocation3], %s1098_s20 }
  0x21   : > { %s284_s18 = sshll.u32 %s276_s5, 4  ;;  %s842_s15 = sshra.s32 %s264_s10, 4  ;;  %s843_s15 = int_to_ptr.hbm [resolvable:$true] %s842_s15  ;;  %s285_s18 = int_to_ptr.vmem [resolvable:$true] %s284_s18 }
  0x22   : > { %s844_s21 = scalar_lea.hbm %s843_s15, 2  ;;  %p846_p11 = pneg %p1107_p2 }
  0x23   : > { %p845_p10 = scmp.ne.s32.totalorder %s843_s15, %s844_s21  ;;  %s849_s29 = scalar_lea.hbm %s1219_s0, 4 }
  0x24   : > { %p850_p0 = scmp.lt.s32.totalorder %s843_s15, %s1219_s0  ;;  %p851_p3 = scmp.lt.s32.totalorder %s849_s29, %s844_s21 }
  0x25   : > { %p847_p12 = pnand %p846_p11, %p845_p10 }
  0x26   : > { %p852_p5 = por %p851_p3, %p850_p0 }
  0x27   : > { %p848_p13 = pneg %p847_p12 }
  0x29   : > { %p853_p9 = pnand %p852_p5, %p848_p13 }
  0x2b   : > { %856 = shalt.err (!%p853_p9)
}
  0x2c   : > { %753 = dma.hbm_to_vmem [thread:$0]  (!%p1107_p2), %s264_s10, 32, %s266_s13, %s254_s26  }
  0x2d   : > { %s727_s5 = sshll.u32 %s976_s27, 6  ;;  %s273_s8 = scalar_lea.sflag [#allocation6], %s272_s17 }
  0x2e   : > { %s281_s22 = scalar_lea.hbm %s1220_s1, %s727_s5  ;;  %s879_s26 = scalar_lea.hbm %s1220_s1, 128 }
  0x2f   : > { %s282_s23 = sshll.u32 %s281_s22, 4  ;;  %s283_s23 = int_to_ptr.hbm [resolvable:$true] %s282_s23 }
  0x30   : > { %s872_s9 = sshra.s32 %s283_s23, 4  ;;  %s873_s9 = int_to_ptr.hbm [resolvable:$true] %s872_s9 }
  0x31   : > { %s874_s15 = scalar_lea.hbm %s873_s9, 64  ;;  %p880_p13 = scmp.lt.s32.totalorder %s873_s9, %s1220_s1 }
  0x32   : > { %p875_p10 = scmp.ne.s32.totalorder %s873_s9, %s874_s15  ;;  %p881_p0 = scmp.lt.s32.totalorder %s879_s26, %s874_s15 }
  0x34   : > { %p877_p9 = pnand %p875_p10, %p846_p11  ;;  %p882_p3 = por %p881_p0, %p880_p13 }
  0x36   : > { %p878_p12 = pneg %p877_p9 }
  0x38   : > { %p883_p5 = pnand %p882_p3, %p878_p12 }
  0x3a   : > { %886 = shalt.err (!%p883_p5)
}
  0x3b   : > { %s979_s17 = smov 64   ;;  %s980_s11 = smov 4  }
  0x3c   : > { %756 = dma.hbm_to_vmem [thread:$0]  (!%p1107_p2), %s283_s23, 1024, %s285_s18, %s273_s8, %s979_s17, %s979_s17, %s980_s11  }
  0x3d   : > { %302 = sbr.rel (%p1069_p8) target bundleno = 517 (0x205), region = 48  ;;  %s1145_s5 = sand.u32 (!%p1069_p8), 1, %s968_s25  }
  0x3e   : > { %s684_s20 = sshll.u32 (!%p1069_p8), %s1145_s5, 1  ;;  %s305_s16 = scalar_lea.sflag (!%p1069_p8), [#allocation3], %s1145_s5 }
  0x3f   : > { %s308_s22 = scalar_lea.vmem (!%p1069_p8), [#allocation2], %s684_s20 }
  0x42   : > { %947 = dma.done.wait (%p1056_p4), %s305_s16, 32  }
  0x43   : > { %949 = vsyncadd (%p1056_p4), %s305_s16, 4294967264  ;;  %s314_s8 = sand.u32 1, %s1047_s28   ;;  %s685_s12 = sshll.u32 %s1145_s5, 6 }
  0x44   : > { %s315_s18 = scalar_lea.sflag [#allocation6], %s314_s8  ;;  %s318_s14 = scalar_lea.vmem [#allocation5], %s685_s12 }
  0x45   : > { %951 = dma.done.wait (%p1056_p4), %s315_s18, 1024  }
  0x46   : > { %953 = vsyncadd (%p1056_p4), %s315_s18, 4294966272 }
  0x47   : > { %955 = dma.done.wait (%p47_p1), [#allocation6], 64  }
  0x48   : > { %957 = vsyncadd (%p47_p1), [#allocation6], 4294967232  ;;  %v735_v0 = vld [vmem:[%s318_s14 + $0x38] sm:$0xff]  ;;  %v734_v1 = vld [vmem:[%s318_s14 + $0x30] sm:$0xff]  ;;  %p363_p1 = scmp.lt.s32.totalorder %s1047_s28, 1  ;;  %v981_v10 = vmov 0  }
  0x49   : > { %434 = vmatpush.bf16.msra.mxu0 %v735_v0  ;;  %v733_v2 = vld [vmem:[%s318_s14 + $0x28] sm:$0xff]  ;;  %v732_v3 = vld [vmem:[%s318_s14 + $0x20] sm:$0xff]  ;;  %v731_v4 = vld [vmem:[%s318_s14 + $0x18] sm:$0xff]  ;;  %805 = vset.pattern.permute.xlu0 %v981_v10  ;;  %v982_v11 = vmov 3   ;;  %v983_v12 = vmov 1   ;;  %vm462_vm0 = vcmask 1041408  }
  0x4a   : > { %v730_v5 = vld [vmem:[%s318_s14 + $0x10] sm:$0xff]  ;;  %v729_v6 = vld [vmem:[%s318_s14 + $0x8] sm:$0xff]  ;;  %v728_v7 = vld [vmem:[%s318_s14] sm:$0xff]  ;;  %s1165_s30 = scalar_select %p363_p1, %s1047_s28, 1  ;;  %807 = vset.pattern.permute.xlu1 %v982_v11  ;;  %vm458_vm1 = vcmask 31744   ;;  %v984_v20 = vmov 2  }
  0x4b   : > { %v367_v8 = vld [vmem:[%s308_s22] sm:$0x3]  ;;  %v985_v21 = vmov 4   ;;  %vm517_vm3 = vcmask 1043456   ;;  %v491_v35 = vld [vmem:[#allocation7] sm:$0xf] }
  0x4c   : > { %s365_s15 = scalar_lea.vmem %s1221_s2, %s1165_s30  ;;  %v385_v9 = vld [vmem:[%s1225_s6] sm:$0xff]  ;;  %v498_v18 = vsel %vm462_vm0, %v367_v8, 0  ;;  %809 = vset.pattern.permute.xlu2 %v985_v21  ;;  %vm513_vm4 = vcmask 64512   ;;  %s687_s16 = sshll.u32 %s1145_s5, 3 }
  0x4d   : > { %435 = vmatpush.bf16.msra.mxu0 %v734_v1  ;;  %451 = vperm.xlu0 %805, %v385_v9   ;;  %v447_v16 = vld [vmem:[%s1222_s3] sm:$0xf]  ;;  %s724_s22 = sshll.u32 %s1047_s28, 3  ;;  %s362_s14 = scalar_lea.vmem [#allocation8], %s687_s16 }
  0x4e   : > { %486 = vperm.xlu1 %807, %v385_v9   ;;  %507 = vmatpush.bf16.msra.mxu2 %v498_v18  ;;  %v493_v19 = vld [vmem:[%s1223_s4] sm:$0xf]  ;;  %s558_s18 = scalar_lea.hbm %s1226_s7, %s724_s22  ;;  %s560_s30 = sshll.u32 %s362_s14, 4  ;;  %s561_s30 = int_to_ptr.vmem [resolvable:$true] %s560_s30 }
  0x4f   : > { %541 = vperm.xlu2 %809, %v385_v9   ;;  %v811_v23 = vld [vmem:[%s365_s15] ss:$0 sm:$0xff]  ;;  %s562_s23 = sshll.u32 %s558_s18, 4  ;;  %s548_s28 = scalar_lea.sflag [#allocation4], %s1145_s5  ;;  %s563_s23 = int_to_ptr.hbm [resolvable:$true] %s562_s23 }
  0x50   : > { %s916_s9 = sshra.s32 %s563_s23, 4  ;;  %s922_s26 = scalar_lea.hbm %s1226_s7, 16  ;;  %s917_s9 = int_to_ptr.hbm [resolvable:$true] %s916_s9 }
  0x51   : > { %436 = vmatpush.bf16.msra.mxu0 %v733_v2  ;;  %721 = vmatmul.msk.bf16.vlgmr.msra.gmra.mxu2 %vm458_vm1, %v493_v19  ;;  %s918_s15 = scalar_lea.hbm %s917_s9, 8  ;;  %p923_p11 = scmp.lt.s32.totalorder %s917_s9, %s1226_s7 }
  0x52   : > { %p919_p4 = scmp.ne.s32.totalorder %s917_s9, %s918_s15  ;;  %p924_p10 = scmp.lt.s32.totalorder %s922_s26, %s918_s15 }
  0x54   : > { %p920_p8 = pnand %p919_p4, %p1093_p7  ;;  %p925_p9 = por %p924_p10, %p923_p11 }
  0x55   : > { %437 = vmatpush.bf16.msra.mxu0 %v732_v3  ;;  %806 = vset.pattern.permute.xlu0 %v983_v12 }
  0x56   : > { %480 = vperm.xlu0 %806, %v385_v9   ;;  %808 = vset.pattern.permute.xlu1 %v984_v20  ;;  %p921_p2 = pneg %p920_p8 }
  0x57   : > { %535 = vperm.xlu1 %808, %v385_v9  }
  0x58   : > { %p926_p12 = pnand %p925_p9, %p921_p2 }
  0x59   : > { %438 = vmatpush.bf16.msra.mxu0 %v731_v4 }
  0x5d   : > { %439 = vmatpush.bf16.msra.mxu0 %v730_v5 }
  0x5e   : > { %810 = vset.pattern.permute.xlu0 %v985_v21 }
  0x61   : > { %440 = vmatpush.bf16.msra.mxu0 %v729_v6 }
  0x65   : > { %441 = vmatpush.bf16.msra.mxu0 %v728_v7 }
  0x68   : > { %442 = vmatmul.bf16.vlgmr.msra.gmra.mxu0 %v367_v8 }
  0xa9   : > { %v542_v41 = vpop.permute.xlu2 %541 }
  0xbf   : > { %v452_v22 = vpop.permute.xlu0 %451 }
  0xc0   : > { %v457_v24 = vmul.f32 %v811_v23, %v452_v22  ;;  %v487_v28 = vpop.permute.xlu1 %486 }
  0xc8   : > { %v481_v26 = vpop.permute.xlu0 %480 }
  0xc9   : > { %v536_v39 = vpop.permute.xlu1 %535 }
  0xd4   : > { %v509_v36 = vpop.f32.mrf.mxu2 }
  0xdc   : > { %v511_v37 = vpop.f32.mrf.mxu2 }
  0xe5   : > { %v443_v13 = vpop.f32.mrf.mxu0 }
  0xe6   : > { %v448_v14 = vpack.c.bf16 %v443_v13, %v443_v13 }
  0xe8   : > { %v464_v15 = vsel %vm462_vm0, %v448_v14, 0 }
  0xe9   : > { %473 = vmatpush.bf16.msra.mxu1 %v464_v15 }
  0xec   : > { %720 = vmatmul.msk.bf16.vlgmr.msra.gmra.mxu1 %vm458_vm1, %v447_v16 }
  0xed   : > { %v445_v17 = vpop.f32.mrf.mxu0 }
 0x169   : > { %v475_v25 = vpop.f32.mrf.mxu1 }
 0x16a   : > { %v476_v27 = vadd.f32 %v475_v25, %v457_v24 }
 0x16c   : > { %v483_v29 = vadd.f32 %v481_v26, %v476_v27 }
 0x16e   : > { %v489_v30 = vmul.f32 %v487_v28, %v483_v29  ;;  %vm484_vm2 = vcmp.gt.f32.partialorder %v483_v29, 0.0 }
 0x170   : > { %v490_v31 = vsel %vm484_vm2, %v483_v29, %v489_v30 }
 0x171   : > { %v477_v32 = vpop.f32.mrf.mxu1  ;;  %v492_v33 = vpack.c.bf16 %v490_v31, %v490_v31 }
 0x173   : > { %v519_v34 = vsel %vm517_vm3, %v492_v33, 0 }
 0x174   : > { %528 = vmatpush.bf16.msra.mxu3 %v519_v34 }
 0x177   : > { %722 = vmatmul.msk.bf16.vlgmr.msra.gmra.mxu3 %vm513_vm4, %v491_v35 }
 0x1fa   : > { %v530_v38 = vpop.f32.mrf.mxu3 }
 0x1fb   : > { %v531_v40 = vadd.f32 %v530_v38, %v509_v36 }
 0x1fd   : > { %v538_v42 = vadd.f32 %v536_v39, %v531_v40 }
 0x1ff   : > { %vm539_vm5 = vcmp.gt.f32.partialorder %v538_v42, 0.0  ;;  %v544_v43 = vmul.f32 %v542_v41, %v538_v42 }
 0x201   : > { %v545_v44 = vsel %vm539_vm5, %v538_v42, %v544_v43 }
 0x202   : > { %v532_v45 = vpop.f32.mrf.mxu3  ;;  %546 = vst [vmem:[%s362_s14] sm:$0xff] %v545_v44 }
 0x203   : > { %929 = shalt.err (!%p926_p12)
}
 0x204   : > { %744 = dma.vmem_to_hbm [thread:$0]  (%p1093_p7), %s561_s30, 128, %s563_s23, %s548_s28  }
 0x205 PF: > { %s574_s17 = sand.u32 1, %s964_s24   ;;  %p1243_p13 = scmp.ge.s32.totalorder %s976_s27, 2 }
 0x206   : > { %s575_s11 = scalar_lea.sflag [#allocation4], %s574_s17 }
 0x207   : > { %p758_p0 = pnand %p1243_p13, %p1061_p6 }
 0x209   : > { %p759_p3 = pneg %p758_p0 }
 0x20b   : > { %959 = dma.done.wait (%p759_p3), %s575_s11, 128  }
 0x20c   : > { %961 = vsyncadd (%p759_p3), %s575_s11, 4294967168  ;;  %s1244_s27 = sld [smem:[#allocation15_spill]]  ;;  %s1247_s24 = smov %s968_s25 }
 0x20d   : > { %s1245_s20 = sld [smem:[#allocation13_spill]] }
 0x20e   : > { %s1246_s26 = sld [smem:[#allocation16_spill]] }
 0x212   : > { %p23_p5 = scmp.ge.s32.totalorder %s1244_s27, 4  }
 0x213   : > { %s1248_s25 = smov %s1245_s20 }
 0x214   :  { %25 = sbr.rel (!%p23_p5) target bundleno = 9 (0x9), region = 113 }
 0x219   :  { %581 = vsyncpa [#allocation3], 1 }
 0x21a   :  { %583 = vsyncpa [#allocation3 + $0x1], 1 }
 0x21b   :  { %584 = vsyncpa [#allocation6], 1 }
 0x21c   :  { %586 = vsyncpa [#allocation6 + $0x1], 1 }
 0x21d   :  { %587 = vsyncpa [#allocation4], 1 }
 0x21e   :  { %589 = vsyncpa [#allocation4 + $0x1], 1 }

</bundles_post_ra>
